<compile_context>
chip_gen: v7x
topology: tpu7x:2x2x1
jax: 0.10.0
libtpu: 0.0.40
codegen_flags: <defaults>
</compile_context>

<pallas_src>
import math
import functools

import jax
import jax.numpy as jnp
from jax.experimental import pallas as pl
from jax.experimental.pallas import tpu as pltpu


# ---------------------------------------------------------------------------
# Hardware / tiling helpers.
# ---------------------------------------------------------------------------
def _vmem_capacity_bytes():
    try:
        info = pltpu.get_tpu_info()
        cap = getattr(info, "vmem_capacity_bytes", None)
        if cap:
            return int(cap)
    except Exception:
        pass
    return 64 * 1024 * 1024          # conservative default (v7x per-core VMEM)


def _vmem_limit(estimate_bytes, cap_bytes):
    """Request limit = estimate (+25% slack), clamped below capacity - headroom."""
    headroom = 16 * 1024 * 1024
    budget = max(cap_bytes - headroom, 16 * 1024 * 1024)
    request = max(int(estimate_bytes * 1.25), 32 * 1024 * 1024)
    return int(min(request, budget))


def _pick_tile(n, max_tile):
    """Largest multiple-of-8 tile <= max_tile that divides n, else n itself."""
    if n <= max_tile:
        return n
    for t in range((max_tile // 8) * 8, 7, -8):
        if n % t == 0:
            return t
    return n


def _pick_kv_tile(n, max_tile, *, lane_dense):
    """kv tile; prefers multiples of 128 (mask tile lane constraint / layout)."""
    if n <= max_tile:
        return n
    if n % 128 == 0:
        for t in range((max_tile // 128) * 128, 127, -128):
            if n % t == 0:
                return t
    t = _pick_tile(n, max_tile)
    if lane_dense and t != n and t % 128 != 0:
        return n                      # keep the mask block's last dim == full extent
    return t


def _pick_heads_per_tile(num_heads, depth, d_model, max_cols):
    """Heads per weight-column tile: largest hn with hn*depth <= max_cols and a
    lane-legal column count (multiple of 128 or the full d_model)."""
    best = None
    for hn in range(1, num_heads + 1):
        if num_heads % hn:
            continue
        ct = hn * depth
        if ct > max_cols:
            break
        if ct % 128 == 0 or ct == d_model:
            best = hn
    if best is None:
        best = num_heads              # fall back to the un-tiled weight
    return best


def _proj_vmem_bytes(rt, D, ct, in_bytes, mm_bytes):
    blocks = 2 * (rt * D * in_bytes + D * ct * in_bytes + rt * ct * mm_bytes)
    inter = 2 * rt * ct * 4
    return blocks + inter


def _attn_vmem_bytes(qt, kt, D, H, depth, mm_bytes, out_bytes, mask_mode):
    blocks = 2 * (qt * D * mm_bytes          # Q tile (double-buffered)
                  + 2 * kt * D * mm_bytes    # K + V tiles
                  + qt * D * out_bytes)      # output tile
    if mask_mode == 1:
        blocks += 2 * qt * kt                # int8 mask tile
    elif mask_mode == 2:
        blocks += 2 * H * qt * kt
    scratch = (2 * H * qt * 128 + H * qt * depth) * 4   # m, l (lane-padded), acc
    inter = 3 * H * qt * kt * 4 + 2 * qt * D * 4        # scores / exp / out relayout
    return blocks + scratch + inter


# ---------------------------------------------------------------------------
# Kernel 1: projection into a head-major (B, H, S, depth) layout.
# ---------------------------------------------------------------------------
def _proj_kernel(x_ref, w_ref, o_ref, *, heads_per_tile, depth, scale, mm_dtype):
    # x_ref: (1, rt, D)   w_ref: (D, ct)   o_ref: (1, heads_per_tile, rt, depth)
    x = x_ref[0].astype(mm_dtype)
    w = w_ref[...].astype(mm_dtype)
    y = jnp.dot(x, w, preferred_element_type=jnp.float32)       # (rt, ct)
    if scale != 1.0:
        y = y * jnp.float32(scale)       # fold 1/sqrt(depth) into Q, once, in f32
    y = y.astype(o_ref.dtype).reshape(y.shape[0], heads_per_tile, depth)
    # head-split done here once per projection tile, not per attention step.
    o_ref[0] = jnp.transpose(y, (1, 0, 2))


# ---------------------------------------------------------------------------
# Kernel 2: flash-style attention over pre-projected, pre-scaled Q/K/V.
# ---------------------------------------------------------------------------
def _attn_kernel(*refs, mm_dtype, mask_mode):
    if mask_mode == 0:
        q_ref, k_ref, v_ref, o_ref, m_sc, l_sc, acc_sc = refs
        mask_ref = None
    else:
        q_ref, k_ref, v_ref, mask_ref, o_ref, m_sc, l_sc, acc_sc = refs

    kv = pl.program_id(2)

    @pl.when(kv == 0)
    def _():
        m_sc[...] = jnp.full_like(m_sc, -jnp.inf)
        l_sc[...] = jnp.zeros_like(l_sc)
        acc_sc[...] = jnp.zeros_like(acc_sc)

    q = q_ref[0]                       # (H, qt, depth)  pre-scaled, mm_dtype
    k = k_ref[0]                       # (H, kt, depth)
    v = v_ref[0]                       # (H, kt, depth)

    # All heads in one batched MXU matmul; contraction over the last dims so no
    # K transpose is materialized.
    s = jnp.einsum("hqd,hkd->hqk", q, k,
                   preferred_element_type=jnp.float32)           # (H, qt, kt)

    if mask_mode == 1:                 # shared (qt, kt) mask, broadcast over heads
        keep = mask_ref[0] != 0
        s = jnp.where(keep[None, :, :], s, jnp.float32(-8.0))
    elif mask_mode == 2:               # per-head (H, qt, kt) mask
        keep = mask_ref[0] != 0
        s = jnp.where(keep, s, jnp.float32(-8.0))

    # Online softmax (flash) update; VMEM bounded independent of full S.
    m_prev = m_sc[...]
    m_new = jnp.maximum(m_prev, jnp.max(s, axis=-1, keepdims=True))
    alpha = jnp.exp(m_prev - m_new)
    p = jnp.exp(s - m_new)
    l_sc[...] = alpha * l_sc[...] + jnp.sum(p, axis=-1, keepdims=True)
    acc_sc[...] = alpha * acc_sc[...] + jnp.einsum(
        "hqk,hkd->hqd", p.astype(mm_dtype), v,
        preferred_element_type=jnp.float32)
    m_sc[...] = m_new

    @pl.when(kv == pl.num_programs(2) - 1)
    def _():
        # Exact reciprocal keeps the f32 path faithful to the reference softmax.
        out = acc_sc[...] * pl.reciprocal(l_sc[...], approx=False)  # (H, qt, dp)
        out = jnp.transpose(out, (1, 0, 2))                          # (qt, H, dp)
        o_ref[0] = out.reshape(o_ref.shape[1], o_ref.shape[2]).astype(o_ref.dtype)


# ---------------------------------------------------------------------------
# Wrapper.
# ---------------------------------------------------------------------------
def multihead_attention(q, k, v, wq, wk, wv, *, num_heads, mask=None,
                        matmul_dtype=None):
    B, S, D = q.shape
    assert k.shape == (B, S, D) and v.shape == (B, S, D)
    assert wq.shape == (D, D) and wk.shape == (D, D) and wv.shape == (D, D)
    assert D % num_heads == 0
    H = num_heads
    depth = D // H

    if matmul_dtype is None:
        # bf16 operands / f32 accumulation by default for f32 inputs: runs the
        # v5e/v6e/v7x MXU at its bf16 peak and halves Q/K/V HBM + VMEM bytes.
        # Pass matmul_dtype=jnp.float32 for exact parity with the reference.
        mm_dtype = jnp.bfloat16 if q.dtype == jnp.dtype(jnp.float32) else q.dtype
    else:
        mm_dtype = jnp.dtype(matmul_dtype)
    mm_bytes = jnp.dtype(mm_dtype).itemsize
    in_bytes = jnp.dtype(q.dtype).itemsize
    out_bytes = in_bytes

    cap = _vmem_capacity_bytes()
    big_vmem = cap > 64 * 1024 * 1024        # v5e/v6e (128 MiB) vs v7x (64 MiB)
    max_tile = 512 if big_vmem else 256
    max_cols = 1024 if big_vmem else 512

    # ---- mask preprocessing (int8, shared or per-head) --------------------
    mask_mode = 0
    mask_arr = None
    if mask is not None:
        m = jnp.asarray(mask)
        if m.ndim == 4:
            if m.shape[1] == 1:
                m = m[:, 0]
            elif m.shape[1] == H:
                mask_mode = 2
                mask_arr = jnp.broadcast_to(m, (B, H, S, S)).astype(jnp.int8)
            else:
                raise ValueError(
                    f"4-D mask head dim must be 1 or num_heads={H}, got {m.shape}")
        if mask_mode == 0:
            mask_mode = 1
            mask_arr = jnp.broadcast_to(m, (B, S, S)).astype(jnp.int8)

    # ---- 1) Q/K/V projections -> head-major (B, H, S, depth) in mm_dtype --
    rt = _pick_tile(S, max_tile)
    hn = _pick_heads_per_tile(H, depth, D, max_cols)
    ct = hn * depth

    proj_params = pltpu.CompilerParams(
        dimension_semantics=("parallel", "parallel", "parallel"),
        vmem_limit_bytes=_vmem_limit(
            _proj_vmem_bytes(rt, D, ct, in_bytes, mm_bytes), cap))

    def _project(x, w, scale):
        # TODO(synk): for very large d_model also tile the contraction dim of
        #             the weight (extra "arbitrary" axis + f32 accumulator);
        #             currently an (rt, D) x (D, ct) product must fit VMEM.
        return pl.pallas_call(
            functools.partial(_proj_kernel, heads_per_tile=hn, depth=depth,
                              scale=scale, mm_dtype=mm_dtype),
            out_shape=jax.ShapeDtypeStruct((B, H, S, depth), mm_dtype),
            grid_spec=pltpu.PrefetchScalarGridSpec(
                num_scalar_prefetch=0,
                # Weight-column axis outermost: each (D, ct) weight tile is
                # DMA'd once and revisited across all (batch, row) tiles.
                grid=(H // hn, B, S // rt),
                in_specs=[
                    pl.BlockSpec((1, rt, D), lambda c, b, r: (b, r, 0)),
                    pl.BlockSpec((D, ct), lambda c, b, r: (0, c)),
                ],
                out_specs=pl.BlockSpec((1, hn, rt, depth),
                                       lambda c, b, r: (b, c, r, 0)),
            ),
            compiler_params=proj_params,
        )(x, w)

    qp = _project(q, wq, 1.0 / math.sqrt(depth))   # scale folded into Q
    kp = _project(k, wk, 1.0)
    vp = _project(v, wv, 1.0)

    # ---- 2) flash-style attention -----------------------------------------
    qt = _pick_tile(S, max_tile)
    kt = _pick_kv_tile(S, max_tile, lane_dense=(mask_mode != 0))
    n_q, n_kv = S // qt, S // kt

    in_specs = [
        pl.BlockSpec((1, H, qt, depth), lambda b, t, kv: (b, 0, t, 0)),
        pl.BlockSpec((1, H, kt, depth), lambda b, t, kv: (b, 0, kv, 0)),
        pl.BlockSpec((1, H, kt, depth), lambda b, t, kv: (b, 0, kv, 0)),
    ]
    inputs = [qp, kp, vp]
    if mask_mode == 1:
        in_specs.append(pl.BlockSpec((1, qt, kt), lambda b, t, kv: (b, t, kv)))
        inputs.append(mask_arr)
    elif mask_mode == 2:
        in_specs.append(
            pl.BlockSpec((1, H, qt, kt), lambda b, t, kv: (b, 0, t, kv)))
        inputs.append(mask_arr)

    # TODO(synk): for very large H (H*qt*kt intermediates near the VMEM budget),
    #             additionally make the head dim a grid axis.
    attn_limit = _vmem_limit(
        _attn_vmem_bytes(qt, kt, D, H, depth, mm_bytes, out_bytes, mask_mode), cap)

    return pl.pallas_call(
        functools.partial(_attn_kernel, mm_dtype=mm_dtype, mask_mode=mask_mode),
        out_shape=jax.ShapeDtypeStruct((B, S, D), q.dtype),
        grid_spec=pltpu.PrefetchScalarGridSpec(
            num_scalar_prefetch=0,
            grid=(B, n_q, n_kv),
            in_specs=in_specs,
            out_specs=pl.BlockSpec((1, qt, D), lambda b, t, kv: (b, t, 0)),
            scratch_shapes=[
                pltpu.VMEM((H, qt, 1), jnp.float32),       # running max m
                pltpu.VMEM((H, qt, 1), jnp.float32),       # running sum l
                pltpu.VMEM((H, qt, depth), jnp.float32),   # output accumulator
            ],
        ),
        compiler_params=pltpu.CompilerParams(
            dimension_semantics=("parallel", "parallel", "arbitrary"),
            vmem_limit_bytes=attn_limit),
    )(*inputs)


# ---------------------------------------------------------------------------
# Pure-JAX reference (mirrors the PyTorch module).
# ---------------------------------------------------------------------------
def _reference(q, k, v, wq, wk, wv, num_heads, mask=None):
    B, S, D = q.shape
    depth = D // num_heads

    def split_heads(x):
        return jnp.transpose(x.reshape(B, S, num_heads, depth), (0, 2, 1, 3))

    qp = split_heads(q @ wq)
    kp = split_heads(k @ wk)
    vp = split_heads(v @ wv)
    scores = jnp.einsum("bhqd,bhkd->bhqk", qp, kp) / jnp.sqrt(jnp.float32(depth))
    if mask is not None:
        m = jnp.asarray(mask)
        if m.ndim == 3:
            m = m[:, None]
        m = jnp.broadcast_to(m, scores.shape)
        scores = jnp.where(m, scores, jnp.float32(-8.0))
    scores = scores - jnp.max(scores, axis=-1, keepdims=True)
    weights = jax.nn.softmax(scores, axis=-1)
    out = jnp.einsum("bhqk,bhkd->bhqd", weights, vp)
    return jnp.transpose(out, (0, 2, 1, 3)).reshape(B, S, D)


if __name__ == "__main__":
    B, S, d_model, num_heads = 2, 8, 32, 4

    key = jax.random.PRNGKey(0)
    kq, kk, kv_, kwq, kwk, kwv, km, km4 = jax.random.split(key, 8)

    q = jax.random.normal(kq, (B, S, d_model), dtype=jnp.float32)
    k = jax.random.normal(kk, (B, S, d_model), dtype=jnp.float32)
    v = jax.random.normal(kv_, (B, S, d_model), dtype=jnp.float32)
    # Xavier-style weight scaling keeps score magnitudes O(1) so the bf16 fast
    # path can be checked against the f32 reference with a meaningful tolerance.
    w_scale = 1.0 / math.sqrt(d_model)
    wq = jax.random.normal(kwq, (d_model, d_model), dtype=jnp.float32) * w_scale
    wk = jax.random.normal(kwk, (d_model, d_model), dtype=jnp.float32) * w_scale
    wv = jax.random.normal(kwv, (d_model, d_model), dtype=jnp.float32) * w_scale

    ref = _reference(q, k, v, wq, wk, wv, num_heads)

    # 1) exact f32 matmul path, no mask.
    out = jax.block_until_ready(
        multihead_attention(q, k, v, wq, wk, wv, num_heads=num_heads,
                            matmul_dtype=jnp.float32))
    assert out.shape == (B, S, d_model)
    assert jnp.allclose(out, ref, atol=1e-2, rtol=1e-2), "f32 unmasked mismatch"

    # 2) exact f32 path, shared boolean mask (masked_fill(mask == False, -8)).
    mask = jax.random.bernoulli(km, 0.8, (B, S, S))
    out_m = jax.block_until_ready(
        multihead_attention(q, k, v, wq, wk, wv, num_heads=num_heads,
                            mask=mask, matmul_dtype=jnp.float32))
    ref_m = _reference(q, k, v, wq, wk, wv, num_heads, mask=mask)
    assert jnp.allclose(out_m, ref_m, atol=1e-2, rtol=1e-2), "f32 masked mismatch"

    # 3) exact f32 path, per-head (B, H, S, S) boolean mask.
    mask4 = jax.random.bernoulli(km4, 0.8, (B, num_heads, S, S))
    out_m4 = jax.block_until_ready(
        multihead_attention(q, k, v, wq, wk, wv, num_heads=num_heads,
                            mask=mask4, matmul_dtype=jnp.float32))
    ref_m4 = _reference(q, k, v, wq, wk, wv, num_heads, mask=mask4)
    assert jnp.allclose(out_m4, ref_m4, atol=1e-2, rtol=1e-2), "per-head mask mismatch"

    # 4) default fast path: bf16 matmul operands, f32 accumulation / softmax.
    out_bf = jax.block_until_ready(
        multihead_attention(q, k, v, wq, wk, wv, num_heads=num_heads))
    assert out_bf.shape == (B, S, d_model)
    assert jnp.allclose(out_bf, ref, atol=1.5e-1, rtol=1e-1), "bf16 fast path mismatch"

    print("KERNEL_OK")
</pallas_src>

<mosaic_0001>
module attributes {stable_mosaic.version = 11 : i64} {
  func.func @_proj_kernel(%arg0: i32, %arg1: i32, %arg2: i32, %arg3: memref<1x8x32xf32, #tpu.memory_space<vmem>>, %arg4: memref<32x32xf32, #tpu.memory_space<vmem>>, %arg5: memref<1x4x8x8xf32, #tpu.memory_space<vmem>>) attributes {dimension_semantics = [#tpu.dimension_semantics<parallel>, #tpu.dimension_semantics<parallel>, #tpu.dimension_semantics<parallel>], iteration_bounds = array<i64: 1, 2, 1>, scalar_prefetch = 0 : i64, scratch_operands = 0 : i64, tpu.core_type = #tpu.core_type<tc>, window_params = [{transform_indices = @transform_0, window_bounds = array<i64: 1, 8, 32>}, {transform_indices = @transform_1, window_bounds = array<i64: 32, 32>}, {transform_indices = @transform_2, window_bounds = array<i64: 1, 4, 8, 8>}]} {
    %c0 = arith.constant 0 : index
    %c0_0 = arith.constant 0 : index
    %c0_1 = arith.constant 0 : index
    %0 = vector.load %arg3[%c0, %c0_0, %c0_1] : memref<1x8x32xf32, #tpu.memory_space<vmem>>, vector<1x8x32xf32>
    %1 = vector.shape_cast %0 : vector<1x8x32xf32> to vector<8x32xf32>
    %c0_2 = arith.constant 0 : index
    %c0_3 = arith.constant 0 : index
    %2 = vector.load %arg4[%c0_2, %c0_3] : memref<32x32xf32, #tpu.memory_space<vmem>>, vector<32x32xf32>
    %cst = arith.constant dense<0.000000e+00> : vector<8x32xf32>
    %3 = tpu.matmul %1, %2, %cst {dimension_numbers = #tpu.dot_dimension_numbers<[1], [0], [0], [1], [0, 0, 1, 1], [], []>} : vector<8x32xf32>, vector<32x32xf32>, vector<8x32xf32> -> vector<8x32xf32>
    %cst_4 = arith.constant 0.353553385 : f32
    %4 = vector.broadcast %cst_4 : f32 to vector<8x32xf32>
    %5 = arith.mulf %3, %4 : vector<8x32xf32>
    %6 = vector.shape_cast %5 : vector<8x32xf32> to vector<8x4x8xf32>
    %7 = tpu.transpose %6, [1, 0, 2] : vector<8x4x8xf32> -> vector<4x8x8xf32>
    %c0_5 = arith.constant 0 : index
    %c0_6 = arith.constant 0 : index
    %c0_7 = arith.constant 0 : index
    %c0_8 = arith.constant 0 : index
    %8 = vector.load %arg5[%c0_5, %c0_6, %c0_7, %c0_8] : memref<1x4x8x8xf32, #tpu.memory_space<vmem>>, vector<1x4x8x8xf32>
    %9 = vector.shape_cast %8 : vector<1x4x8x8xf32> to vector<4x8x8xf32>
    %10 = vector.shape_cast %7 : vector<4x8x8xf32> to vector<1x4x8x8xf32>
    tpu.vector_store %arg5[%c0_5, %c0_6, %c0_7, %c0_8], %10 {strides = array<i32>} : memref<1x4x8x8xf32, #tpu.memory_space<vmem>>, vector<1x4x8x8xf32>,
    return
  }
  func.func @transform_0(%arg0: i32, %arg1: i32, %arg2: i32) -> (i32, i32, i32) {
    %c0_i32 = arith.constant 0 : i32
    %c0_i32_0 = arith.constant 0 : i32
    return %arg1, %arg2, %c0_i32 : i32, i32, i32
  }
  func.func @transform_1(%arg0: i32, %arg1: i32, %arg2: i32) -> (i32, i32) {
    %c0_i32 = arith.constant 0 : i32
    %c0_i32_0 = arith.constant 0 : i32
    return %c0_i32, %arg0 : i32, i32
  }
  func.func @transform_2(%arg0: i32, %arg1: i32, %arg2: i32) -> (i32, i32, i32, i32) {
    %c0_i32 = arith.constant 0 : i32
    %c0_i32_0 = arith.constant 0 : i32
    return %arg1, %arg0, %arg2, %c0_i32 : i32, i32, i32, i32
  }
}

</mosaic_0001>

<bundles_post_ra>
// kernel: tpu_custom_call.1
= control target key start
LH: loop header
LB: loop body
LE: loop exit
PB: predicated region body
PF: predicated region fallthrough
CT: control target
= control target key end

     0   :  { %7 = vsyncpa [#allocation3], 0  ;;  %s1077_s0 = inlined_call_operand.hbm [shape: f32[2,8,32], index: 0, kind: input, shape index: {}]   ;;  %s1078_s1 = inlined_call_operand.hbm [shape: f32[32,32], index: 1, kind: input, shape index: {}]   ;;  %s1079_s2 = inlined_call_operand.hbm [shape: f32[2,4,8,8], index: 2, kind: output, shape index: {}]  }
   0x1   :  { %9 = vsyncpa [#allocation3 + $0x1], 0 }
   0x2   :  { %10 = vsyncpa [#allocation6], 0 }
   0x3   :  { %11 = vsyncpa [#allocation4], 0 }
   0x4   :  { %13 = vsyncpa [#allocation4 + $0x1], 0  ;;  %s860_s9 = smov 0   ;;  %s862_s10 = smov 0  }
   0x5   :  { %s864_s11 = smov 0   ;;  %s866_s12 = smov 0  }
   0x6   :  { %s868_s13 = smov 0   ;;  %s870_s14 = smov 0  }
   0x7 LB: > { %s557_s15 = sadd.s32 4294967295, %s828_s14   ;;  %s558_s16 = sadd.s32 4294967294, %s828_s14   ;;  %s828_s14 = sphi %s870_s14, %s19_s14   ;;  %s824_s13 = sphi %s868_s13, %s1103_s13   ;;  %s820_s12 = sphi %s866_s12, %s1102_s12   ;;  %s816_s11 = sphi %s864_s11, %s1101_s11   ;;  %s812_s10 = sphi %s862_s10, %s1100_s10   ;;  %s808_s9 = sphi %s860_s9, %s1099_s9  }
   0x8   : > { %p60_p0 = scmp.ne.s32.totalorder %s812_s10, %s808_s9  ;;  %p894_p1 = scmp.eq.s32.totalorder %s557_s15, 0 }
   0x9   : > { %p898_p2 = scmp.eq.s32.totalorder %s557_s15, 1  ;;  %p120_p3 = scmp.eq.s32.totalorder %s558_s16, 1 }
   0xa   : > { %s1084_s17 = scalar_select %p894_p1, 1, 0 }
   0xb   : > { %s1085_s18 = scalar_select %p898_p2, 1, 0 }
   0xc   : > { %p904_p4 = por %p894_p1, %p60_p0  ;;  %p559_p5 = scmp.ge.s32.totalorder %s828_s14, 1 }
   0xd   : > { %p909_p6 = por %p120_p3, %p60_p0  ;;  %p127_p7 = scmp.lt.s32.totalorder %s828_s14, 3 }
   0xe   : > { %s1086_s19 = scalar_select %p904_p4, 1, 0 }
   0xf   : > { %s1087_s20 = scalar_select %p909_p6, 1, 0 }
  0x10   : > { %p914_p8 = pnand %p559_p5, %p127_p7  ;;  %s830_s22 = smov [#allocation5]  }
  0x11   : > { %s141_s23 = sshll.u32 %s830_s22, 4  ;;  %s34_s25 = sadd.s32 1, %s824_s13  ;;  %s142_s23 = int_to_ptr.vmem [resolvable:$true] %s141_s23 }
  0x12   : > { %s1088_s21 = scalar_select %p914_p8, 1, 0 }
  0x13   : > { %p607_p9 = pneg %p914_p8  ;;  %s684_s28 = scalar_lea.hbm %s1078_s1, 512 }
  0x14   : > { %p685_p12 = scmp.ne.s32.totalorder %s1078_s1, %s684_s28  ;;  %p691_p5 = scmp.lt.u32.totalorder %s684_s28, %s1078_s1 }
  0x15   : > { %p923_p11 = pnand %p607_p9, %p894_p1 }
  0x17   : > { %p686_p13 = pneg %p923_p11 }
  0x19   : > { %p687_p0 = pnand %p686_p13, %p685_p12 }
  0x1b   : > { %p688_p3 = pneg %p687_p0 }
  0x1d   : > { %p693_p7 = pnand %p691_p5, %p688_p3 }
  0x1f   : > { %696 = shalt.err (!%p693_p7)
}
  0x20   : > { %s697_s5 = scalar_lea.vmem %s142_s23, 512  ;;  %p705_p1 = scmp.lt.s32.totalorder %s142_s23, %s142_s23 }
  0x21   : > { %p698_p9 = scmp.ne.s32.totalorder %s142_s23, %s697_s5  ;;  %p706_p4 = scmp.lt.s32.totalorder %s697_s5, %s697_s5 }
  0x23   : > { %p700_p10 = pnand %p698_p9, %p686_p13  ;;  %p707_p8 = por %p706_p4, %p705_p1 }
  0x25   : > { %p701_p6 = pneg %p700_p10 }
  0x27   : > { %p708_p2 = pnand %p707_p8, %p701_p6 }
  0x29   : > { %711 = shalt.err (!%p708_p2)
}
  0x2a   : > { %s831_s6 = smov 128   ;;  %s832_s7 = smov 8  }
  0x2b   : > { %610 = dma.hbm_to_vmem [thread:$0]  (!%p923_p11), %s1078_s1, 512, %s142_s23, [#allocation6], %s831_s6, %s831_s6, %s832_s7  }
  0x2c   : > { %p36_p1 = scmp.ge.s32.totalorder %s34_s25, 2  ;;  %s47_s16 = sadd.s32 1, %s816_s11 }
  0x2d   : > { %p54_p2 = scmp.ne.s32.totalorder %s816_s11, %s812_s10  ;;  %p55_p4 = scmp.eq.s32.totalorder %s828_s14, 0 }
  0x2e   : > { %s1105_s25 = smov (%p36_p1, %s34_s25), 0  ;;  %p1091_p8 = scmp.ne.s32.totalorder %s1085_s18, 0 }
  0x2f   : > { %p950_p6 = por %p55_p4, %p54_p2  ;;  %s42_s24 = ssub.s32 %s824_s13, %s1105_s25 }
  0x30   : > { %p956_p10 = por %p1091_p8, %p54_p2  ;;  %p620_p12 = scmp.lt.s32.totalorder %s828_s14, 2 }
  0x31   : > { %p45_p11 = scmp.eq.s32.totalorder %s42_s24, 0  ;;  %s155_s23 = sand.u32 1, %s816_s11  }
  0x32   : > { %s562_s27 = sshll.u32 %s155_s23, 3  ;;  %s563_s29 = sshll.u32 %s824_s13, 7 }
  0x33   : > { %s965_s28 = scalar_select %p45_p11, %s816_s11, %s47_s16  }
  0x34   : > { %s971_s4 = scalar_lea.hbm %s1077_s0, %s563_s29  ;;  %s159_s18 = scalar_lea.vmem [#allocation2], %s562_s27 }
  0x35   : > { %s167_s5 = sshll.u32 %s159_s18, 4  ;;  %p977_p13 = pnand %p620_p12, %p950_p6  ;;  %s973_s5 = int_to_ptr.vmem [resolvable:$true] %s167_s5 }
  0x36   : > { %s156_s7 = scalar_lea.sflag [#allocation3], %s155_s23  ;;  %s712_s8 = scalar_lea.hbm %s971_s4, 128 }
  0x37   : > { %p713_p0 = scmp.ne.s32.totalorder %s971_s4, %s712_s8  ;;  %p714_p3 = pneg %p977_p13 }
  0x38   : > { %s717_s24 = scalar_lea.hbm %s1077_s0, 256  ;;  %p718_p9 = scmp.lt.u32.totalorder %s971_s4, %s1077_s0 }
  0x39   : > { %p715_p5 = pnand %p714_p3, %p713_p0  ;;  %p719_p1 = scmp.lt.u32.totalorder %s717_s24, %s712_s8 }
  0x3a   : > { %p721_p4 = scmp.lt.u32.totalorder %s712_s8, %s971_s4 }
  0x3b   : > { %p716_p7 = pneg %p715_p5  ;;  %p720_p2 = por %p719_p1, %p718_p9 }
  0x3d   : > { %p722_p6 = por %p721_p4, %p720_p2 }
  0x3f   : > { %p723_p8 = pnand %p722_p6, %p716_p7 }
  0x41   : > { %726 = shalt.err (!%p723_p8)
}
  0x42   : > { %s727_s23 = scalar_lea.vmem %s973_s5, 128  ;;  %s833_s29 = smov [#allocation2]  }
  0x43   : > { %p728_p12 = scmp.ne.s32.totalorder %s973_s5, %s727_s23  ;;  %s732_s30 = sshll.u32 %s833_s29, 4  ;;  %s733_s30 = int_to_ptr.vmem [resolvable:$false] %s732_s30 }
  0x44   : > { %s734_s3 = scalar_lea.vmem %s733_s30, 256  ;;  %p735_p5 = scmp.lt.s32.totalorder %s973_s5, %s733_s30 }
  0x45   : > { %p730_p11 = pnand %p728_p12, %p714_p3  ;;  %p736_p9 = scmp.lt.s32.totalorder %s734_s3, %s727_s23 }
  0x47   : > { %p731_p0 = pneg %p730_p11  ;;  %p737_p1 = por %p736_p9, %p735_p5 }
  0x49   : > { %p738_p2 = pnand %p737_p1, %p731_p0 }
  0x4b   : > { %741 = shalt.err (!%p738_p2)
}
  0x4c   : > { %614 = dma.hbm_to_vmem [thread:$0]  (!%p977_p13), %s971_s4, 128, %s973_s5, %s156_s7  }
  0x4d   : > { %p1094_p7 = scmp.ne.s32.totalorder %s1088_s21, 0 }
  0x4e   : > { %s1009_s18 = sand.u32 (!%p1094_p7), 1, %s812_s10   ;;  %p1095_p3 = scmp.ne.s32.totalorder (!%p1094_p7), %s1086_s19, 0 }
  0x4f   : > { %176 = sbr.rel (%p1094_p7) target bundleno = 468 (0x1d4), region = 28  ;;  %s565_s8 = sshll.u32 (!%p1094_p7), %s1009_s18, 3 }
  0x50   : > { %s179_s15 = scalar_lea.sflag (!%p1094_p7), [#allocation3], %s1009_s18  ;;  %s182_s16 = scalar_lea.vmem (!%p1094_p7), [#allocation2], %s565_s8 }
  0x56   : > { %795 = dma.done.wait (%p1095_p3), %s179_s15, 128  }
  0x57   : > { %797 = vsyncadd (%p1095_p3), %s179_s15, 4294967168  ;;  %p1096_p4 = scmp.ne.s32.totalorder %s1084_s17, 0 }
  0x59   : > { %799 = dma.done.wait (%p1096_p4), [#allocation6], 512  }
  0x5a   : > { %801 = vsyncadd (%p1096_p4), [#allocation6], 4294966784  ;;  %v834_v0 = vmov 0.0|0.0   ;;  %vm835_vm0 = vmmov 0   ;;  %v836_v1 = vmov 0.0   ;;  %v209_v2 = vld [vmem:[#allocation5] sm:$0xff]  ;;  %v303_v14 = vlaneseq }
  0x5b   : > { %593 = vmatprep.subr.bf16.mxu0 %v834_v0  ;;  %590 = vmatprep.mubr.msk.f32.mxu0 %vm835_vm0, %v836_v1  ;;  %v210_v3 = vld [vmem:[#allocation5 + $0x8] sm:$0xff]  ;;  %v211_v4 = vld [vmem:[#allocation5 + $0x10] sm:$0xff]  ;;  %v212_v6 = vld [vmem:[#allocation5 + $0x18] sm:$0xff]  ;;  %vm213_vm1 = vcmask 261120   ;;  %s837_s17 = smov 104   ;;  %s838_s19 = smov 120  }
  0x5c   : > { %v594_v5 = vpack.c.bf16 %v210_v3, %v209_v2  ;;  %v597_v7 = vpack.c.bf16 %v212_v6, %v211_v4  ;;  %v208_v8 = vld [vmem:[%s182_s16] sm:$0xff]  ;;  %s839_s21 = smov 112   ;;  %v840_v12 = vmov 1983009808   ;;  %v841_v15 = vmov 1934713408  }
  0x5d   : > { %v301_v13 = vunpack.c.l.s4 %v840_v12  ;;  %v333_v16 = vunpack.c.l.s4 %v841_v15  ;;  %v304_v18 = vshrl.u32 %v303_v14, 7  ;;  %s567_s4 = sshll.u32 %s1009_s18, 5  ;;  %s576_s5 = sshll.u32 %s820_s12, 9  ;;  %vm434_vm2 = vcmask 64512  }
  0x5e   : > { %595 = vmatpush3.bf16.msra.mxu0 %v594_v5  ;;  %s206_s6 = scalar_lea.vmem [#allocation7], %s567_s4  ;;  %s1026_s27 = scalar_lea.hbm %s1079_s2, %s576_s5 }
  0x5f   : > { %596 = vmatprep.subr.bf16.mxu0 %v834_v0  ;;  %v302_v17 = vunpack.c.0.s8 %v301_v13  ;;  %v334_v21 = vunpack.c.0.s8 %v333_v16  ;;  %s456_s7 = sshll.u32 %s206_s6, 4  ;;  %s440_s12 = scalar_lea.sflag [#allocation4], %s1009_s18  ;;  %s1028_s7 = int_to_ptr.vmem [resolvable:$true] %s456_s7 }
  0x60   : > { %s742_s23 = scalar_lea.vmem %s1028_s7, 512  ;;  %s842_s29 = smov [#allocation7]  }
  0x61   : > { %v305_v22 = vsub.s32 %v302_v17, %v304_v18  ;;  %v337_v28 = vsub.s32 %v334_v21, %v304_v18  ;;  %p743_p13 = scmp.ne.s32.totalorder %s1028_s7, %s742_s23  ;;  %s746_s30 = sshll.u32 %s842_s29, 4  ;;  %s747_s30 = int_to_ptr.vmem [resolvable:$false] %s746_s30 }
  0x62   : > { %598 = vmatpush3.bf16.msra.mxu0 %v597_v7  ;;  %s748_s3 = scalar_lea.vmem %s747_s30, 1024  ;;  %p749_p12 = scmp.lt.s32.totalorder %s1028_s7, %s747_s30 }
  0x63   : > { %p744_p6 = pnand %p743_p13, %p956_p10  ;;  %p750_p11 = scmp.lt.s32.totalorder %s748_s3, %s742_s23 }
  0x65   : > { %591 = vmatmul.mubr.msk.f32.vlgmr.msra.gmra.mrb[0].mxu0 %vm213_vm1, %v208_v8  ;;  %p745_p8 = pneg %p744_p6  ;;  %p751_p0 = por %p750_p11, %p749_p12 }
  0x67   : > { %p752_p5 = pnand %p751_p0, %p745_p8 }
 0x138   : > { %v283_v9 = vpop.f32.mrb[0].mxu0 }
 0x139   : > { %v287_v10 = vmul.f32 0.35355338, %v283_v9  ;;  %v592_v11 = vpop.f32.mrb[1].mxu0 }
 0x13b   : > { %295 = vrot.lane.b32.xlu1 %v287_v10, %s837_s17  ;;  %289 = vrot.lane.b32.xlu0 %v287_v10, %s838_s19 }
 0x13f   : > { %292 = vrot.lane.b32.xlu0 %v287_v10, %s839_s21 }
 0x1ad   : > { %v296_v19 = vpop.permute.xlu1 %295  ;;  %v290_v20 = vpop.permute.xlu0 %289 }
 0x1ae   : > { %v314_v23 = vcombine.low %v290_v20, %v296_v19  ;;  %v315_v24 = vcombine.high %v290_v20, %v296_v19 }
 0x1b0   : > { %v322_v29 = vrot.slane %v314_v23, %v305_v22  ;;  %v329_v30 = vrot.slane %v315_v24, %v305_v22 }
 0x1b1   : > { %v293_v25 = vpop.permute.xlu0 %292 }
 0x1b2   : > { %v298_v26 = vcombine.low %v287_v10, %v293_v25  ;;  %v299_v27 = vcombine.high %v287_v10, %v293_v25 }
 0x1b4   : > { %v306_v31 = vrot.slane %v298_v26, %v305_v22  ;;  %v313_v32 = vrot.slane %v299_v27, %v305_v22 }
 0x1b6   : > { %v330_v33 = vcombine.low %v306_v31, %v322_v29  ;;  %v331_v34 = vcombine.high %v306_v31, %v322_v29  ;;  %v346_v35 = vcombine.low %v313_v32, %v329_v30  ;;  %v347_v36 = vcombine.high %v313_v32, %v329_v30 }
 0x1b8   : > { %v338_v37 = vrot.slane %v330_v33, %v337_v28  ;;  %v345_v38 = vrot.slane %v331_v34, %v337_v28  ;;  %v354_v39 = vrot.slane %v346_v35, %v337_v28  ;;  %v361_v40 = vrot.slane %v347_v36, %v337_v28 }
 0x1ba   : > { %v366_v41 = vcombine.low %v338_v37, %v345_v38  ;;  %v569_v42 = vcombine.high %v338_v37, %v345_v38  ;;  %v382_v43 = vcombine.low %v354_v39, %v361_v40  ;;  %v570_v44 = vcombine.high %v354_v39, %v361_v40 }
 0x1bc   : > { %v373_v45 = vrot.slane %v366_v41, %v305_v22  ;;  %v381_v46 = vrot.slane %v569_v42, %v305_v22  ;;  %v389_v47 = vrot.slane %v382_v43, %v305_v22  ;;  %v397_v48 = vrot.slane %v570_v44, %v305_v22 }
 0x1be   : > { %v398_v49 = vcombine.low %v373_v45, %v381_v46  ;;  %v399_v50 = vcombine.high %v373_v45, %v381_v46  ;;  %v414_v51 = vcombine.low %v389_v47, %v397_v48  ;;  %v415_v52 = vcombine.high %v389_v47, %v397_v48 }
 0x1c0   : > { %v406_v53 = vrot.slane %v398_v49, %v337_v28  ;;  %v413_v54 = vrot.slane %v399_v50, %v337_v28  ;;  %v422_v55 = vrot.slane %v414_v51, %v337_v28  ;;  %v429_v56 = vrot.slane %v415_v52, %v337_v28 }
 0x1c2   : > { %v430_v57 = vcombine.low %v406_v53, %v422_v55  ;;  %v431_v58 = vcombine.high %v406_v53, %v422_v55  ;;  %v432_v59 = vcombine.low %v413_v54, %v429_v56  ;;  %v433_v60 = vcombine.high %v413_v54, %v429_v56 }
 0x1c4   : > { %435 = vst.msk [vmem:[%s206_s6] sm:$0xff] %vm434_vm2, %v430_v57  ;;  %436 = vst.msk [vmem:[%s206_s6 + $0x8] sm:$0xff] %vm434_vm2, %v431_v58 }
 0x1c5   : > { %437 = vst.msk [vmem:[%s206_s6 + $0x10] sm:$0xff] %vm434_vm2, %v432_v59  ;;  %438 = vst.msk [vmem:[%s206_s6 + $0x18] sm:$0xff] %vm434_vm2, %v433_v60 }
 0x1c6   : > { %755 = shalt.err (!%p752_p5)
}
 0x1c7   : > { %s756_s8 = scalar_lea.hbm %s1026_s27, 512  ;;  %s760_s17 = scalar_lea.hbm %s1079_s2, 1024 }
 0x1c8   : > { %p757_p9 = scmp.ne.s32.totalorder %s1026_s27, %s756_s8  ;;  %p761_p7 = scmp.lt.u32.totalorder %s1026_s27, %s1079_s2 }
 0x1c9   : > { %p762_p3 = scmp.lt.u32.totalorder %s760_s17, %s756_s8  ;;  %p764_p13 = scmp.lt.u32.totalorder %s756_s8, %s1026_s27 }
 0x1ca   : > { %p758_p1 = pnand %p757_p9, %p956_p10 }
 0x1cb   : > { %p763_p4 = por %p762_p3, %p761_p7 }
 0x1cc   : > { %p759_p2 = pneg %p758_p1 }
 0x1cd   : > { %p765_p6 = por %p764_p13, %p763_p4 }
 0x1cf   : > { %p766_p8 = pnand %p765_p6, %p759_p2 }
 0x1d1   : > { %769 = shalt.err (!%p766_p8)
}
 0x1d2   : > { %s843_s4 = smov 128   ;;  %s844_s5 = smov 8  }
 0x1d3   : > { %605 = dma.vmem_to_hbm [thread:$0]  (%p956_p10), %s1028_s7, 512, %s1026_s27, %s440_s12, %s843_s4, %s843_s4, %s844_s5  }
 0x1d4 PF: > { %s471_s6 = sand.u32 1, %s808_s9   ;;  %p1097_p12 = scmp.ne.s32.totalorder %s1087_s20, 0 }
 0x1d5   : > { %p1098_p11 = scmp.ge.s32.totalorder %s828_s14, 2  ;;  %s472_s24 = scalar_lea.sflag [#allocation4], %s471_s6 }
 0x1d7   : > { %p616_p0 = pnand %p1098_p11, %p1097_p12 }
 0x1d9   : > { %803 = dma.done.wait (!%p616_p0), %s472_s24, 512  }
 0x1da   : > { %805 = vsyncadd (!%p616_p0), %s472_s24, 4294966784  ;;  %s19_s14 = sadd.s32 1, %s828_s14   ;;  %s1099_s9 = smov %s812_s10 }
 0x1db   : > { %p16_p5 = scmp.ge.s32.totalorder %s19_s14, 4   ;;  %s1100_s10 = smov %s816_s11 }
 0x1dc   : > { %s1101_s11 = smov %s965_s28  ;;  %s1102_s12 = smov %s824_s13 }
 0x1dd   : > { %s1103_s13 = smov %s1105_s25  ;;  %18 = sbr.rel (!%p16_p5) target bundleno = 7 (0x7), region = 78 }
 0x1e4   :  { %477 = vsyncpa [#allocation3], 1 }
 0x1e5   :  { %479 = vsyncpa [#allocation3 + $0x1], 1 }
 0x1e6   :  { %480 = vsyncpa [#allocation6], 1 }
 0x1e7   :  { %481 = vsyncpa [#allocation4], 1 }
 0x1e8   :  { %483 = vsyncpa [#allocation4 + $0x1], 1 }

</bundles_post_ra>
